<compile_context>
chip_gen: v5e
topology: v5e:2x2
jax: 0.10.0
libtpu: 0.0.40
codegen_flags: <defaults>
</compile_context>

<pallas_src>
import functools

import jax
import jax.numpy as jnp
from jax.experimental import pallas as pl
from jax.experimental.pallas import tpu as pltpu

_LANE = 128
_SUBLANE = 8


def _round_up(n, m):
    return ((n + m - 1) // m) * m


# ---------------------------------------------------------------------------
# Fused whole-network kernel (K-tiled first layer)
# ---------------------------------------------------------------------------
def _make_fused_mlp_kernel(num_hidden):
    """Kernel refs: x, w0, b0, (w_i, b_i)*(num_hidden-1), w_out, b_out, o, acc."""

    def kernel(*refs):
        x_ref, w0_ref, b0_ref = refs[0], refs[1], refs[2]
        o_ref, acc_ref = refs[-2], refs[-1]
        rest = refs[3:-2]

        k = pl.program_id(1)

        @pl.when(k == 0)
        def _():
            acc_ref[...] = jnp.zeros_like(acc_ref)

        # K-tiled first-layer matmul: bf16 operands, f32 accumulation in VMEM scratch.
        acc_ref[...] += jnp.dot(
            x_ref[...], w0_ref[...], preferred_element_type=jnp.float32
        )

        @pl.when(k == pl.num_programs(1) - 1)
        def _():
            # BatchNorm is folded into the linear; Dropout is identity at inference.
            h = jnp.maximum(acc_ref[...] + b0_ref[...], 0.0)  # f32 bias + ReLU
            idx = 0
            for _ in range(num_hidden - 1):
                w = rest[idx][...]
                b = rest[idx + 1][...]
                idx += 2
                y = jnp.dot(h.astype(w.dtype), w, preferred_element_type=jnp.float32)
                h = jnp.maximum(y + b, 0.0)
            # Output head: plain Linear, no activation.
            w = rest[idx][...]
            b = rest[idx + 1][...]
            y = jnp.dot(h.astype(w.dtype), w, preferred_element_type=jnp.float32) + b
            o_ref[...] = y.astype(o_ref.dtype)

    return kernel


def _vmem_limit_bytes(tm, tk, layer_params, out_p):
    """Resident VMEM estimate: double-buffered tiles + once-buffered weights + scratch."""
    w0, b0 = layer_params[0]
    h0_p = w0.shape[1]
    total = 2 * tm * tk * w0.dtype.itemsize          # x tile (bf16), double-buffered
    total += 2 * tk * h0_p * w0.dtype.itemsize       # W0 K-tile (bf16), double-buffered
    total += b0.size * b0.dtype.itemsize             # b0 (f32), single-buffered
    for w, b in layer_params[1:]:
        total += w.size * w.dtype.itemsize + b.size * b.dtype.itemsize  # single-buffered
    total += tm * h0_p * 4                           # f32 accumulator scratch
    total += 2 * tm * out_p * 4                      # f32 output tile, double-buffered
    total += 4 << 20                                 # headroom
    return int(min(max(total, 16 << 20), 100 << 20))


def fused_dense_forward(x_padded, layer_params, tm, tk):
    """x_padded: (batch_p, feat_p) bf16; layer_params: [(w_bf16_p, b_f32_p), ...]."""
    batch_p, feat_p = x_padded.shape
    h0_p = layer_params[0][0].shape[1]
    out_p = layer_params[-1][0].shape[1]
    num_hidden = len(layer_params) - 1
    grid = (batch_p // tm, feat_p // tk)  # reduction axis last

    in_specs = [
        pl.BlockSpec((tm, tk), lambda i, k: (i, k)),        # x batch/K tile
        pl.BlockSpec((tk, h0_p), lambda i, k: (k, 0)),      # W0 K tile (double-buffered)
        pl.BlockSpec(layer_params[0][1].shape, lambda i, k: (0, 0),
                     pipeline_mode=pl.Buffered(1)),         # b0 (grid-invariant)
    ]
    flat_params = [layer_params[0][0], layer_params[0][1]]
    for w, b in layer_params[1:]:
        in_specs.append(pl.BlockSpec(w.shape, lambda i, k: (0, 0),
                                     pipeline_mode=pl.Buffered(1)))
        in_specs.append(pl.BlockSpec(b.shape, lambda i, k: (0, 0),
                                     pipeline_mode=pl.Buffered(1)))
        flat_params.extend([w, b])

    return pl.pallas_call(
        _make_fused_mlp_kernel(num_hidden),
        out_shape=jax.ShapeDtypeStruct((batch_p, out_p), jnp.float32),
        grid=grid,
        in_specs=in_specs,
        out_specs=pl.BlockSpec((tm, out_p), lambda i, k: (i, 0)),
        scratch_shapes=[pltpu.VMEM((tm, h0_p), jnp.float32)],
        compiler_params=pltpu.CompilerParams(
            dimension_semantics=("parallel", "arbitrary"),
            vmem_limit_bytes=_vmem_limit_bytes(tm, tk, layer_params, out_p),
        ),
    )(x_padded, *flat_params)


# ---------------------------------------------------------------------------
# Parameter preparation (call ONCE, outside the jitted forward):
# fold BN (eval) into Linear in f32, zero-pad to lane multiples, cast weights to bf16
# ---------------------------------------------------------------------------
def prepare_dense_model_params(params):
    eps = params["eps"]
    layers = []
    for blk in params["blocks"]:
        w = blk["w"].astype(jnp.float32)
        b = blk["b"].astype(jnp.float32)
        scale = blk["gamma"].astype(jnp.float32) / jnp.sqrt(
            blk["running_var"].astype(jnp.float32) + eps
        )
        shift = blk["beta"].astype(jnp.float32) - blk["running_mean"].astype(jnp.float32) * scale
        layers.append((w * scale, b * scale + shift))  # BN folded into Linear (f32)
    layers.append((params["out_w"].astype(jnp.float32), params["out_b"].astype(jnp.float32)))

    padded = []
    for w, b in layers:
        in_f, out_f = w.shape
        in_p = _round_up(in_f, _LANE)
        out_f_p = _round_up(out_f, _LANE)
        w_p = jnp.pad(w, ((0, in_p - in_f), (0, out_f_p - out_f))).astype(jnp.bfloat16)
        b_p = jnp.pad(b, ((0, 0), (0, out_f_p - out_f)))  # bias stays f32 (added to f32 acc)
        padded.append((w_p, b_p))
    return padded


def _pick_tm(batch):
    if batch >= 512:
        return 256                                    # feed 256-wide MXU, still >=2 tiles
    if batch >= 256:
        return 128
    if batch >= 16:
        return _round_up((batch + 1) // 2, _SUBLANE)  # >=2 tiles for v7x megacore
    return _round_up(max(batch, 1), _SUBLANE)


def _pick_tk(feat_p):
    for tk in (1024, 512, 256, 128):
        if feat_p % tk == 0:
            return tk
    return feat_p


@functools.partial(jax.jit, static_argnums=(2,))
def dense_model_forward(layer_params, x, num_classes):
    """layer_params: output of prepare_dense_model_params (precomputed once)."""
    batch, num_features = x.shape
    feat_p = layer_params[0][0].shape[0]

    tm = _pick_tm(batch)
    batch_p = _round_up(batch, tm)
    tk = _pick_tk(feat_p)

    x_p = jnp.pad(x, ((0, batch_p - batch), (0, feat_p - num_features))).astype(jnp.bfloat16)
    out = fused_dense_forward(x_p, layer_params, tm, tk)
    return out[:batch, :num_classes]


# ---------------------------------------------------------------------------
# Synthetic parameters + pure-JAX reference
# ---------------------------------------------------------------------------
def init_dense_model_params(key, hidden_layers, num_features, num_classes, eps=1e-5):
    """Deterministic synthetic parameters matching dense_model.__init__ shapes."""
    if num_classes == 2:
        num_classes = 1
    params = {"blocks": [], "eps": eps}
    in_f = num_features
    for out_f in hidden_layers:
        key, kw, kb, kg, kbe, km, kv = jax.random.split(key, 7)
        blk = {
            # Linear (stored as (in, out) so the kernel computes x @ W + b)
            "w": jax.random.normal(kw, (in_f, out_f), jnp.float32) * 0.05,
            "b": jax.random.normal(kb, (1, out_f), jnp.float32) * 0.05,
            # BatchNorm1d running stats + affine
            "gamma": 1.0 + 0.1 * jax.random.normal(kg, (1, out_f), jnp.float32),
            "beta": 0.1 * jax.random.normal(kbe, (1, out_f), jnp.float32),
            "running_mean": 0.1 * jax.random.normal(km, (1, out_f), jnp.float32),
            "running_var": 1.0 + 0.1 * jax.random.uniform(kv, (1, out_f), jnp.float32),
        }
        params["blocks"].append(blk)
        in_f = out_f
    key, kw, kb = jax.random.split(key, 3)
    params["out_w"] = jax.random.normal(kw, (in_f, num_classes), jnp.float32) * 0.05
    params["out_b"] = jax.random.normal(kb, (1, num_classes), jnp.float32) * 0.05
    return params


def _reference_forward(params, x):
    """Pure-JAX f32 reference (unfused, unpadded) for sanity checking."""
    eps = params["eps"]
    h = x
    for blk in params["blocks"]:
        y = h @ blk["w"] + blk["b"]
        y = (y - blk["running_mean"]) / jnp.sqrt(blk["running_var"] + eps)
        y = y * blk["gamma"] + blk["beta"]
        h = jnp.maximum(y, 0.0)
    return h @ params["out_w"] + params["out_b"]


if __name__ == "__main__":
    # Small config consistent with the module: tfidf features -> hidden MLP -> binary head.
    batch = 2
    num_features = 32
    hidden_layers = [32, 16]
    num_classes = 2  # -> single-logit output, as in the PyTorch module

    key = jax.random.PRNGKey(0)
    key_p, key_x = jax.random.split(key)
    params = init_dense_model_params(key_p, hidden_layers, num_features, num_classes)
    x = jax.random.normal(key_x, (batch, num_features), jnp.float32)

    # Fold/pad/cast ONCE (outside the jitted forward), reuse across calls.
    prepared = prepare_dense_model_params(params)
    eff_classes = params["out_w"].shape[1]

    out = dense_model_forward(prepared, x, eff_classes)
    out = jax.block_until_ready(out)

    ref = _reference_forward(params, x)
    assert out.shape == (batch, eff_classes), out.shape
    # bf16 operands -> slightly looser tolerance than the pure-f32 version.
    assert jnp.allclose(out, ref, atol=2e-2, rtol=2e-2), (out, ref)

    print("KERNEL_OK")
</pallas_src>

<mosaic_0001>
module attributes {stable_mosaic.version = 11 : i64} {
  func.func @kernel(%arg0: i32, %arg1: i32, %arg2: memref<8x128xbf16, #tpu.memory_space<vmem>>, %arg3: memref<128x128xbf16, #tpu.memory_space<vmem>>, %arg4: memref<1x128xf32, #tpu.memory_space<vmem>>, %arg5: memref<128x128xbf16, #tpu.memory_space<vmem>>, %arg6: memref<1x128xf32, #tpu.memory_space<vmem>>, %arg7: memref<128x128xbf16, #tpu.memory_space<vmem>>, %arg8: memref<1x128xf32, #tpu.memory_space<vmem>>, %arg9: memref<8x128xf32, #tpu.memory_space<vmem>>, %arg10: memref<8x128xf32, #tpu.memory_space<vmem>>) attributes {dimension_semantics = [#tpu.dimension_semantics<parallel>, #tpu.dimension_semantics<arbitrary>], iteration_bounds = array<i64: 1, 1>, scalar_prefetch = 0 : i64, scratch_operands = 1 : i64, tpu.core_type = #tpu.core_type<tc>, window_params = [{transform_indices = @transform_0, window_bounds = array<i64: 8, 128>}, {transform_indices = @transform_1, window_bounds = array<i64: 128, 128>}, {pipeline_mode = #tpu.pipeline_mode<synchronous>, transform_indices = @transform_2, window_bounds = array<i64: 1, 128>}, {pipeline_mode = #tpu.pipeline_mode<synchronous>, transform_indices = @transform_3, window_bounds = array<i64: 128, 128>}, {pipeline_mode = #tpu.pipeline_mode<synchronous>, transform_indices = @transform_4, window_bounds = array<i64: 1, 128>}, {pipeline_mode = #tpu.pipeline_mode<synchronous>, transform_indices = @transform_5, window_bounds = array<i64: 128, 128>}, {pipeline_mode = #tpu.pipeline_mode<synchronous>, transform_indices = @transform_6, window_bounds = array<i64: 1, 128>}, {transform_indices = @transform_7, window_bounds = array<i64: 8, 128>}]} {
    %c0_i32 = arith.constant 0 : i32
    %0 = arith.cmpi eq, %arg1, %c0_i32 : i32
    %1 = arith.extui %0 : i1 to i32
    %c0_i32_0 = arith.constant 0 : i32
    %2 = arith.cmpi ne, %1, %c0_i32_0 : i32
    scf.if %2 {
      %cst_10 = arith.constant 0.000000e+00 : f32
      %12 = vector.broadcast %cst_10 : f32 to vector<8x128xf32>
      %c0_11 = arith.constant 0 : index
      %c0_12 = arith.constant 0 : index
      %13 = vector.load %arg10[%c0_11, %c0_12] : memref<8x128xf32, #tpu.memory_space<vmem>>, vector<8x128xf32>
      tpu.vector_store %arg10[%c0_11, %c0_12], %12 {strides = array<i32>} : memref<8x128xf32, #tpu.memory_space<vmem>>, vector<8x128xf32>,
    } else {
    }
    %c0 = arith.constant 0 : index
    %c0_1 = arith.constant 0 : index
    %3 = vector.load %arg10[%c0, %c0_1] : memref<8x128xf32, #tpu.memory_space<vmem>>, vector<8x128xf32>
    %c0_2 = arith.constant 0 : index
    %c0_3 = arith.constant 0 : index
    %4 = vector.load %arg2[%c0_2, %c0_3] : memref<8x128xbf16, #tpu.memory_space<vmem>>, vector<8x128xbf16>
    %c0_4 = arith.constant 0 : index
    %c0_5 = arith.constant 0 : index
    %5 = vector.load %arg3[%c0_4, %c0_5] : memref<128x128xbf16, #tpu.memory_space<vmem>>, vector<128x128xbf16>
    %cst = arith.constant dense<0.000000e+00> : vector<8x128xf32>
    %6 = tpu.matmul %4, %5, %cst {dimension_numbers = #tpu.dot_dimension_numbers<[1], [0], [0], [1], [0, 0, 1, 1], [], []>} : vector<8x128xbf16>, vector<128x128xbf16>, vector<8x128xf32> -> vector<8x128xf32>
    %7 = arith.addf %3, %6 : vector<8x128xf32>
    %c0_6 = arith.constant 0 : index
    %c0_7 = arith.constant 0 : index
    %8 = vector.load %arg10[%c0_6, %c0_7] : memref<8x128xf32, #tpu.memory_space<vmem>>, vector<8x128xf32>
    tpu.vector_store %arg10[%c0_6, %c0_7], %7 {strides = array<i32>} : memref<8x128xf32, #tpu.memory_space<vmem>>, vector<8x128xf32>,
    %c0_i32_8 = arith.constant 0 : i32
    %9 = arith.cmpi eq, %arg1, %c0_i32_8 : i32
    %10 = arith.extui %9 : i1 to i32
    %c0_i32_9 = arith.constant 0 : i32
    %11 = arith.cmpi ne, %10, %c0_i32_9 : i32
    scf.if %11 {
      %c0_10 = arith.constant 0 : index
      %c0_11 = arith.constant 0 : index
      %12 = vector.load %arg10[%c0_10, %c0_11] : memref<8x128xf32, #tpu.memory_space<vmem>>, vector<8x128xf32>
      %c0_12 = arith.constant 0 : index
      %c0_13 = arith.constant 0 : index
      %13 = vector.load %arg4[%c0_12, %c0_13] : memref<1x128xf32, #tpu.memory_space<vmem>>, vector<1x128xf32>
      %14 = vector.broadcast %13 : vector<1x128xf32> to vector<8x128xf32>
      %15 = arith.addf %12, %14 : vector<8x128xf32>
      %cst_14 = arith.constant 0.000000e+00 : f32
      %16 = vector.broadcast %cst_14 : f32 to vector<8x128xf32>
      %17 = arith.maximumf %15, %16 : vector<8x128xf32>
      %c0_15 = arith.constant 0 : index
      %c0_16 = arith.constant 0 : index
      %18 = vector.load %arg5[%c0_15, %c0_16] : memref<128x128xbf16, #tpu.memory_space<vmem>>, vector<128x128xbf16>
      %c0_17 = arith.constant 0 : index
      %c0_18 = arith.constant 0 : index
      %19 = vector.load %arg6[%c0_17, %c0_18] : memref<1x128xf32, #tpu.memory_space<vmem>>, vector<1x128xf32>
      %20 = arith.truncf %17 : vector<8x128xf32> to vector<8x128xbf16>
      %cst_19 = arith.constant dense<0.000000e+00> : vector<8x128xf32>
      %21 = tpu.matmul %20, %18, %cst_19 {dimension_numbers = #tpu.dot_dimension_numbers<[1], [0], [0], [1], [0, 0, 1, 1], [], []>} : vector<8x128xbf16>, vector<128x128xbf16>, vector<8x128xf32> -> vector<8x128xf32>
      %22 = vector.broadcast %19 : vector<1x128xf32> to vector<8x128xf32>
      %23 = arith.addf %21, %22 : vector<8x128xf32>
      %cst_20 = arith.constant 0.000000e+00 : f32
      %24 = vector.broadcast %cst_20 : f32 to vector<8x128xf32>
      %25 = arith.maximumf %23, %24 : vector<8x128xf32>
      %c0_21 = arith.constant 0 : index
      %c0_22 = arith.constant 0 : index
      %26 = vector.load %arg7[%c0_21, %c0_22] : memref<128x128xbf16, #tpu.memory_space<vmem>>, vector<128x128xbf16>
      %c0_23 = arith.constant 0 : index
      %c0_24 = arith.constant 0 : index
      %27 = vector.load %arg8[%c0_23, %c0_24] : memref<1x128xf32, #tpu.memory_space<vmem>>, vector<1x128xf32>
      %28 = arith.truncf %25 : vector<8x128xf32> to vector<8x128xbf16>
      %cst_25 = arith.constant dense<0.000000e+00> : vector<8x128xf32>
      %29 = tpu.matmul %28, %26, %cst_25 {dimension_numbers = #tpu.dot_dimension_numbers<[1], [0], [0], [1], [0, 0, 1, 1], [], []>} : vector<8x128xbf16>, vector<128x128xbf16>, vector<8x128xf32> -> vector<8x128xf32>
      %30 = vector.broadcast %27 : vector<1x128xf32> to vector<8x128xf32>
      %31 = arith.addf %29, %30 : vector<8x128xf32>
      %c0_26 = arith.constant 0 : index
      %c0_27 = arith.constant 0 : index
      %32 = vector.load %arg9[%c0_26, %c0_27] : memref<8x128xf32, #tpu.memory_space<vmem>>, vector<8x128xf32>
      tpu.vector_store %arg9[%c0_26, %c0_27], %31 {strides = array<i32>} : memref<8x128xf32, #tpu.memory_space<vmem>>, vector<8x128xf32>,
    } else {
    }
    return
  }
  func.func @transform_0(%arg0: i32, %arg1: i32) -> (i32, i32) {
    %c0_i32 = arith.constant 0 : i32
    return %arg0, %arg1 : i32, i32
  }
  func.func @transform_1(%arg0: i32, %arg1: i32) -> (i32, i32) {
    %c0_i32 = arith.constant 0 : i32
    %c0_i32_0 = arith.constant 0 : i32
    return %arg1, %c0_i32 : i32, i32
  }
  func.func @transform_2(%arg0: i32, %arg1: i32) -> (i32, i32) {
    %c0_i32 = arith.constant 0 : i32
    %c0_i32_0 = arith.constant 0 : i32
    %c0_i32_1 = arith.constant 0 : i32
    return %c0_i32, %c0_i32_0 : i32, i32
  }
  func.func @transform_3(%arg0: i32, %arg1: i32) -> (i32, i32) {
    %c0_i32 = arith.constant 0 : i32
    %c0_i32_0 = arith.constant 0 : i32
    %c0_i32_1 = arith.constant 0 : i32
    return %c0_i32, %c0_i32_0 : i32, i32
  }
  func.func @transform_4(%arg0: i32, %arg1: i32) -> (i32, i32) {
    %c0_i32 = arith.constant 0 : i32
    %c0_i32_0 = arith.constant 0 : i32
    %c0_i32_1 = arith.constant 0 : i32
    return %c0_i32, %c0_i32_0 : i32, i32
  }
  func.func @transform_5(%arg0: i32, %arg1: i32) -> (i32, i32) {
    %c0_i32 = arith.constant 0 : i32
    %c0_i32_0 = arith.constant 0 : i32
    %c0_i32_1 = arith.constant 0 : i32
    return %c0_i32, %c0_i32_0 : i32, i32
  }
  func.func @transform_6(%arg0: i32, %arg1: i32) -> (i32, i32) {
    %c0_i32 = arith.constant 0 : i32
    %c0_i32_0 = arith.constant 0 : i32
    %c0_i32_1 = arith.constant 0 : i32
    return %c0_i32, %c0_i32_0 : i32, i32
  }
  func.func @transform_7(%arg0: i32, %arg1: i32) -> (i32, i32) {
    %c0_i32 = arith.constant 0 : i32
    %c0_i32_0 = arith.constant 0 : i32
    return %arg0, %c0_i32 : i32, i32
  }
}

</mosaic_0001>

<bundles_post_ra>
// kernel: dense_model_forward.1
= control target key start
LH: loop header
LB: loop body
LE: loop exit
PB: predicated region body
PF: predicated region fallthrough
CT: control target
= control target key end

     0   :  { %12 = vsyncpa [#allocation4], 0  ;;  %s614_s0 = inlined_call_operand.vmem [shape: bf16[8,128], index: 0, kind: input, shape index: {}]   ;;  %s615_s1 = inlined_call_operand.hbm [shape: bf16[128,128], index: 1, kind: input, shape index: {}]   ;;  %s616_s2 = inlined_call_operand.vmem [shape: f32[1,128], index: 2, kind: input, shape index: {}]   ;;  %s617_s3 = inlined_call_operand.hbm [shape: bf16[128,128], index: 3, kind: input, shape index: {}]   ;;  %s618_s4 = inlined_call_operand.vmem [shape: f32[1,128], index: 4, kind: input, shape index: {}]   ;;  %s619_s5 = inlined_call_operand.hbm [shape: bf16[128,128], index: 5, kind: input, shape index: {}]   ;;  %s620_s6 = inlined_call_operand.vmem [shape: f32[1,128], index: 6, kind: input, shape index: {}]   ;;  %s621_s7 = inlined_call_operand.vmem [shape: f32[8,128], index: 7, kind: output, shape index: {}]  }
   0x1   :  { %13 = vsyncpa [#allocation6], 0  ;;  %s35_s26 = sshll.u32 %s617_s3, 4  ;;  %s545_s27 = smov [#allocation5]   ;;  %s36_s26 = int_to_ptr.hbm [resolvable:$true] %s35_s26 }
   0x2   :  { %s37_s28 = sshll.u32 %s545_s27, 4  ;;  %s20_s8 = sshll.u32 %s615_s1, 4  ;;  %s38_s28 = int_to_ptr.vmem [resolvable:$true] %s37_s28  ;;  %s21_s8 = int_to_ptr.hbm [resolvable:$true] %s20_s8 }
   0x3   :  { %s546_s9 = smov 64   ;;  %s547_s10 = smov 4  }
   0x4   :  { %43 = dma.hbm_to_vmem [thread:$0]  %s36_s26, 1024, %s38_s28, [#allocation6], %s546_s9, %s546_s9, %s547_s10  }
   0x5   :  { %s548_s11 = smov [#allocation3]   ;;  %s50_s15 = sshll.u32 %s619_s5, 4  ;;  %s51_s15 = int_to_ptr.hbm [resolvable:$true] %s50_s15 }
   0x6   :  { %s22_s12 = sshll.u32 %s548_s11, 4  ;;  %s549_s3 = smov [#allocation7]   ;;  %s23_s12 = int_to_ptr.vmem [resolvable:$true] %s22_s12 }
   0x7   :  { %28 = dma.hbm_to_vmem [thread:$0]  %s21_s8, 1024, %s23_s12, [#allocation4], %s546_s9, %s546_s9, %s547_s10  }
   0x8   :  { %s52_s16 = sshll.u32 %s549_s3, 4  ;;  %s53_s16 = int_to_ptr.vmem [resolvable:$true] %s52_s16 }
   0x9   :  { %58 = dma.hbm_to_vmem [thread:$0]  %s51_s15, 1024, %s53_s16, [#allocation6], %s546_s9, %s546_s9, %s547_s10  }
   0xa   :  { %541 = dma.done.wait [#allocation4], 1024  }
   0xb   :  { %542 = vsyncadd [#allocation4], 4294966272 }
   0xc   :  { %543 = dma.done.wait [#allocation6], 2048  }
   0xd   :  { %544 = vsyncadd [#allocation6], 4294965248  ;;  %v444_v0 = vld [vmem:[#allocation3 + $0x38] sm:$0xff]  ;;  %v443_v1 = vld [vmem:[#allocation3 + $0x30] sm:$0xff] }
   0xe   :  { %144 = vmatpush.bf16.msra.mxu0 %v444_v0  ;;  %v452_v2 = vld [vmem:[#allocation5 + $0x38] sm:$0xff]  ;;  %v451_v3 = vld [vmem:[#allocation5 + $0x30] sm:$0xff]  ;;  %v442_v4 = vld [vmem:[#allocation3 + $0x28] sm:$0xff] }
   0xf   :  { %238 = vmatpush.bf16.msra.mxu1 %v452_v2  ;;  %v450_v5 = vld [vmem:[#allocation5 + $0x28] sm:$0xff]  ;;  %v441_v6 = vld [vmem:[#allocation3 + $0x20] sm:$0xff]  ;;  %v440_v8 = vld [vmem:[#allocation3 + $0x18] sm:$0xff] }
  0x10   :  { %v449_v7 = vld [vmem:[#allocation5 + $0x20] sm:$0xff]  ;;  %v448_v9 = vld [vmem:[#allocation5 + $0x18] sm:$0xff]  ;;  %v439_v10 = vld [vmem:[#allocation3 + $0x10] sm:$0xff] }
  0x11   :  { %v447_v11 = vld [vmem:[#allocation5 + $0x10] sm:$0xff]  ;;  %v438_v12 = vld [vmem:[#allocation3 + $0x8] sm:$0xff]  ;;  %v437_v13 = vld [vmem:[#allocation3] sm:$0xff] }
  0x12   :  { %145 = vmatpush.bf16.msra.mxu0 %v443_v1  ;;  %v79_v14 = vld [vmem:[%s614_s0] sm:$0xf]  ;;  %v446_v15 = vld [vmem:[#allocation5 + $0x8] sm:$0xff]  ;;  %v460_v17 = vld [vmem:[#allocation7 + $0x38] sm:$0xff] }
  0x13   :  { %239 = vmatpush.bf16.msra.mxu1 %v451_v3  ;;  %v445_v16 = vld [vmem:[#allocation5] sm:$0xff]  ;;  %321 = vmatpush.bf16.msra.mxu2 %v460_v17  ;;  %v459_v18 = vld [vmem:[#allocation7 + $0x30] sm:$0xff]  ;;  %v458_v19 = vld [vmem:[#allocation7 + $0x28] sm:$0xff] }
  0x14   :  { %v457_v20 = vld [vmem:[#allocation7 + $0x20] sm:$0xff]  ;;  %v456_v21 = vld [vmem:[#allocation7 + $0x18] sm:$0xff]  ;;  %v455_v22 = vld [vmem:[#allocation7 + $0x10] sm:$0xff] }
  0x15   :  { %v466_v23 = vld [vmem:[%s616_s2] ss:$0 sm:$0xff]  ;;  %v454_v29 = vld [vmem:[#allocation7 + $0x8] sm:$0xff] }
  0x16   :  { %146 = vmatpush.bf16.msra.mxu0 %v442_v4  ;;  %v453_v30 = vld [vmem:[#allocation7] sm:$0xff] }
  0x17   :  { %240 = vmatpush.bf16.msra.mxu1 %v450_v5  ;;  %322 = vmatpush.bf16.msra.mxu2 %v459_v18  ;;  %v467_v31 = vld [vmem:[%s618_s4] ss:$0 sm:$0xff] }
  0x18   :  { %v468_v37 = vld [vmem:[%s620_s6] ss:$0 sm:$0xff] }
  0x1a   :  { %147 = vmatpush.bf16.msra.mxu0 %v441_v6 }
  0x1b   :  { %241 = vmatpush.bf16.msra.mxu1 %v449_v7  ;;  %323 = vmatpush.bf16.msra.mxu2 %v458_v19 }
  0x1e   :  { %148 = vmatpush.bf16.msra.mxu0 %v440_v8 }
  0x1f   :  { %242 = vmatpush.bf16.msra.mxu1 %v448_v9  ;;  %324 = vmatpush.bf16.msra.mxu2 %v457_v20 }
  0x22   :  { %149 = vmatpush.bf16.msra.mxu0 %v439_v10 }
  0x23   :  { %243 = vmatpush.bf16.msra.mxu1 %v447_v11  ;;  %325 = vmatpush.bf16.msra.mxu2 %v456_v21 }
  0x26   :  { %150 = vmatpush.bf16.msra.mxu0 %v438_v12 }
  0x27   :  { %244 = vmatpush.bf16.msra.mxu1 %v446_v15  ;;  %326 = vmatpush.bf16.msra.mxu2 %v455_v22 }
  0x2a   :  { %151 = vmatpush.bf16.msra.mxu0 %v437_v13 }
  0x2b   :  { %245 = vmatpush.bf16.msra.mxu1 %v445_v16  ;;  %327 = vmatpush.bf16.msra.mxu2 %v454_v29 }
  0x2d   :  { %152 = vmatmul.bf16.vlgmr.msra.gmra.mxu0 %v79_v14 }
  0x2f   :  { %328 = vmatpush.bf16.msra.mxu2 %v453_v30 }
  0xaa   :  { %v153_v24 = vpop.f32.mrf.mxu0 }
  0xab   :  { %v167_v25 = vadd.f32 %v466_v23, %v153_v24 }
  0xad   :  { %v168_v26 = vmax.f32 %v167_v25, 0.0 }
  0xaf   :  { %v186_v27 = vpack.c.bf16 %v168_v26, %v168_v26 }
  0xb1   :  { %246 = vmatmul.bf16.vlgmr.msra.gmra.mxu1 %v186_v27 }
  0xb2   :  { %v155_v28 = vpop.f32.mrf.mxu0 }
 0x12e   :  { %v247_v32 = vpop.f32.mrf.mxu1 }
 0x12f   :  { %v248_v33 = vadd.f32 %v467_v31, %v247_v32 }
 0x131   :  { %v251_v34 = vmax.f32 %v248_v33, 0.0 }
 0x133   :  { %v269_v35 = vpack.c.bf16 %v251_v34, %v251_v34 }
 0x135   :  { %329 = vmatmul.bf16.vlgmr.msra.gmra.mxu2 %v269_v35 }
 0x136   :  { %v249_v36 = vpop.f32.mrf.mxu1 }
 0x1b8   :  { %v330_v38 = vpop.f32.mrf.mxu2 }
 0x1b9   :  { %v331_v39 = vadd.f32 %v468_v37, %v330_v38 }
 0x1bb   :  { %334 = vst [vmem:[%s621_s7] sm:$0xff] %v331_v39 }
 0x1c0   :  { %v332_v40 = vpop.f32.mrf.mxu2 }
 0x1c1   :  { %339 = vsyncpa [#allocation4], 1 }
 0x1c2   :  { %340 = vsyncpa [#allocation6], 1 }

</bundles_post_ra>
